<compile_context>
chip_gen: v5e
topology: v5e:2x2
jax: 0.10.0
libtpu: 0.0.40
codegen_flags: <defaults>
</compile_context>

<pallas_src>
import functools

import jax
import jax.numpy as jnp
from jax import lax
from jax.experimental import pallas as pl
from jax.experimental.pallas import tpu as pltpu

NUM_CLASSES = 182
GAMMA = 2.0
LABEL_SMOOTHING = 0.0

# Default batch-tile cap: (4096 x 256-lane-padded) f32 logits double-buffered is
# ~8 MiB, which fits the default scoped VMEM on v5e (16 MiB), v6e (32 MiB) and
# v7x (32 MiB) without raising vmem_limit_bytes.
_DEFAULT_BLOCK_ROWS = 4096


def _round_up(x: int, m: int) -> int:
    return ((x + m - 1) // m) * m


def _focal_loss_kernel(logits_ref, target_ref, out_ref, *, gamma, eps, n_total, tn):
    i = pl.program_id(0)
    last = pl.num_programs(0) - 1

    x = logits_ref[...].astype(jnp.float32)       # (TN, C)
    t = target_ref[...]                           # (TN, 1) int32
    rows, c = x.shape

    # Numerically-stable log-softmax pieces along the class (lane) axis.
    # We never materialize the full (TN, C) logp array.
    m = jnp.max(x, axis=-1, keepdims=True)                     # (TN, 1)
    xs = x - m                                                  # (TN, C)
    sum_exp = jnp.sum(jnp.exp(xs), axis=-1, keepdims=True)      # (TN, 1)
    lse = jnp.log(sum_exp)                                      # (TN, 1)

    # Gather xs at the target class via one-hot mask (no dynamic gather on TPU).
    cls = lax.broadcasted_iota(jnp.int32, (rows, c), 1)         # (TN, C)
    onehot = cls == t                                           # (TN, C) bool
    xs_target = jnp.sum(jnp.where(onehot, xs, 0.0), axis=-1, keepdims=True)
    logp_target = xs_target - lse                               # (TN, 1)

    # torch.nn.CrossEntropyLoss(reduction='none', label_smoothing=eps):
    #   ce_i = (1 - eps) * (-logp[i, t_i]) + (eps / C) * sum_c (-logp[i, c])
    if eps != 0.0:
        # sum_c -logp[i, c] = C * lse_i - sum_c xs[i, c]
        sum_xs = jnp.sum(xs, axis=-1, keepdims=True)            # (TN, 1)
        mean_neg_logp = (float(c) * lse - sum_xs) * (1.0 / float(c))
        ce = (1.0 - eps) * (-logp_target) + eps * mean_neg_logp
    else:
        ce = -logp_target

    logpt = -ce                                                 # (TN, 1), <= 0
    pt = jnp.exp(logpt)
    if gamma == 2.0:
        q = 1.0 - pt
        focal = q * q
    elif gamma == 1.0:
        focal = 1.0 - pt
    elif gamma == 0.0:
        focal = jnp.ones_like(pt)
    else:
        focal = (1.0 - pt) ** gamma
    loss = -focal * logpt                                       # (TN, 1)

    # Mask rows past the true batch size (ragged / padded final tile).
    row = lax.broadcasted_iota(jnp.int32, (rows, 1), 0)
    valid = row < (n_total - i * tn)
    tile_sum = jnp.sum(jnp.where(valid, loss, 0.0))

    @pl.when(i == 0)
    def _():
        out_ref[0, 0] = 0.0

    out_ref[0, 0] += tile_sum

    @pl.when(i == last)
    def _():
        out_ref[0, 0] = out_ref[0, 0] * (1.0 / float(n_total))


def focal_loss(
    logits,
    targets,
    *,
    gamma=GAMMA,
    label_smoothing=LABEL_SMOOTHING,
    block_rows=None,
):
    """logits: (N, C) float (f32 or bf16); targets: (N,) int class ids. Returns scalar f32."""
    n, c = logits.shape
    if block_rows is None:
        block_rows = _DEFAULT_BLOCK_ROWS
    tn = _round_up(min(int(block_rows), _round_up(n, 8)), 8)
    grid = pl.cdiv(n, tn)

    t2 = targets.reshape(n, 1).astype(jnp.int32)

    kernel = functools.partial(
        _focal_loss_kernel,
        gamma=float(gamma),          # Python floats -> trace-time constants,
        eps=float(label_smoothing),  # no captured jnp scalars.
        n_total=int(n),
        tn=int(tn),
    )

    cost = pl.CostEstimate(
        flops=8 * n * c,
        transcendentals=n * c + 2 * n,
        bytes_accessed=int(logits.size) * logits.dtype.itemsize + t2.size * 4 + 4,
    )

    out = pl.pallas_call(
        kernel,
        out_shape=jax.ShapeDtypeStruct((1, 1), jnp.float32),
        grid=(grid,),
        in_specs=[
            pl.BlockSpec((tn, c), lambda i: (i, 0)),   # logits tile, streamed
            pl.BlockSpec((tn, 1), lambda i: (i, 0)),   # targets tile
        ],
        # Scalar accumulator lives in SMEM; same block every step -> resident
        # across the reduction axis, written back once at the end.
        out_specs=pl.BlockSpec((1, 1), lambda i: (0, 0), memory_space=pltpu.SMEM),
        compiler_params=pltpu.CompilerParams(
            dimension_semantics=("arbitrary",),
        ),
        cost_estimate=cost,
    )(logits, t2)
    return out[0, 0]


def _focal_loss_ref(logits, targets, *, gamma=GAMMA, label_smoothing=LABEL_SMOOTHING):
    # Pure-JAX reference mirroring the PyTorch module.
    x = logits.astype(jnp.float32)
    logp = jax.nn.log_softmax(x, axis=-1)
    n, c = x.shape
    logp_target = jnp.take_along_axis(logp, targets.reshape(n, 1), axis=-1)[:, 0]
    ce = (1.0 - label_smoothing) * (-logp_target) + label_smoothing * jnp.mean(-logp, axis=-1)
    logpt = -ce
    pt = jnp.exp(logpt)
    loss = -((1.0 - pt) ** gamma) * logpt
    return jnp.mean(loss)


if __name__ == "__main__":
    key = jax.random.PRNGKey(0)
    k_logits, k_tgt, k_logits2, k_tgt2 = jax.random.split(key, 4)

    # Case 1: defaults (gamma=2, label_smoothing=0), single tile.
    batch = 8
    logits = jax.random.normal(k_logits, (batch, NUM_CLASSES), dtype=jnp.float32)
    targets = jax.random.randint(k_tgt, (batch,), 0, NUM_CLASSES, dtype=jnp.int32)

    out = jax.block_until_ready(focal_loss(logits, targets))
    ref = _focal_loss_ref(logits, targets)
    assert jnp.allclose(out, ref, rtol=1e-5, atol=1e-6), (out, ref)

    # Case 2: multi-tile grid with a ragged last tile (exercises masking and the
    # SMEM accumulator), plus non-default gamma / label smoothing branches.
    batch2 = 20
    logits2 = jax.random.normal(k_logits2, (batch2, NUM_CLASSES), dtype=jnp.float32)
    targets2 = jax.random.randint(k_tgt2, (batch2,), 0, NUM_CLASSES, dtype=jnp.int32)

    out2 = jax.block_until_ready(
        focal_loss(logits2, targets2, gamma=1.5, label_smoothing=0.1, block_rows=8)
    )
    ref2 = _focal_loss_ref(logits2, targets2, gamma=1.5, label_smoothing=0.1)
    assert jnp.allclose(out2, ref2, rtol=1e-5, atol=1e-6), (out2, ref2)

    print("KERNEL_OK")
</pallas_src>

<mosaic_0001>
module attributes {stable_mosaic.version = 11 : i64} {
  func.func @_focal_loss_kernel(%arg0: i32, %arg1: memref<8x182xf32, #tpu.memory_space<vmem>>, %arg2: memref<8x1xi32, #tpu.memory_space<vmem>>, %arg3: memref<1x1xf32, #tpu.memory_space<smem>>) attributes {dimension_semantics = [#tpu.dimension_semantics<arbitrary>], iteration_bounds = array<i64: 1>, scalar_prefetch = 0 : i64, scratch_operands = 0 : i64, tpu.core_type = #tpu.core_type<tc>, window_params = [{transform_indices = @transform_0, window_bounds = array<i64: 8, 182>}, {transform_indices = @transform_1, window_bounds = array<i64: 8, 1>}, {transform_indices = @transform_2, window_bounds = array<i64: 1, 1>}]} {
    %c0 = arith.constant 0 : index
    %c0_0 = arith.constant 0 : index
    %0 = vector.load %arg1[%c0, %c0_0] : memref<8x182xf32, #tpu.memory_space<vmem>>, vector<8x182xf32>
    %c0_1 = arith.constant 0 : index
    %c0_2 = arith.constant 0 : index
    %1 = vector.load %arg2[%c0_1, %c0_2] : memref<8x1xi32, #tpu.memory_space<vmem>>, vector<8x1xi32>
    %cst = arith.constant dense<0xFF800000> : vector<8xf32>
    %2 = vector.multi_reduction <maximumf>, %0, %cst [1] : vector<8x182xf32> to vector<8xf32>
    %3 = vector.shape_cast %2 : vector<8xf32> to vector<8x1xf32>
    %4 = vector.broadcast %3 : vector<8x1xf32> to vector<8x182xf32>
    %5 = arith.subf %0, %4 : vector<8x182xf32>
    %6 = math.exp %5 : vector<8x182xf32>
    %cst_3 = arith.constant dense<0.000000e+00> : vector<8xf32>
    %7 = vector.multi_reduction <add>, %6, %cst_3 [1] : vector<8x182xf32> to vector<8xf32>
    %8 = vector.shape_cast %7 : vector<8xf32> to vector<8x1xf32>
    %9 = math.log %8 : vector<8x1xf32>
    %10 = tpu.iota {dimensions = array<i32: 1>} : vector<8x182xi32>
    %11 = vector.broadcast %1 : vector<8x1xi32> to vector<8x182xi32>
    %12 = arith.cmpi eq, %10, %11 : vector<8x182xi32>
    %cst_4 = arith.constant 0.000000e+00 : f32
    %13 = vector.broadcast %cst_4 : f32 to vector<8x182xf32>
    %14 = arith.select %12, %5, %13 : vector<8x182xi1>, vector<8x182xf32>
    %cst_5 = arith.constant dense<0.000000e+00> : vector<8xf32>
    %15 = vector.multi_reduction <add>, %14, %cst_5 [1] : vector<8x182xf32> to vector<8xf32>
    %16 = vector.shape_cast %15 : vector<8xf32> to vector<8x1xf32>
    %17 = arith.subf %16, %9 : vector<8x1xf32>
    %cst_6 = arith.constant 0.000000e+00 : f32
    %18 = vector.broadcast %cst_6 : f32 to vector<8x1xf32>
    %19 = arith.subf %18, %17 : vector<8x1xf32>
    %cst_7 = arith.constant 0.000000e+00 : f32
    %20 = vector.broadcast %cst_7 : f32 to vector<8x1xf32>
    %21 = arith.subf %20, %19 : vector<8x1xf32>
    %22 = math.exp %21 : vector<8x1xf32>
    %cst_8 = arith.constant 1.000000e+00 : f32
    %23 = vector.broadcast %cst_8 : f32 to vector<8x1xf32>
    %24 = arith.subf %23, %22 : vector<8x1xf32>
    %25 = arith.mulf %24, %24 : vector<8x1xf32>
    %cst_9 = arith.constant 0.000000e+00 : f32
    %26 = vector.broadcast %cst_9 : f32 to vector<8x1xf32>
    %27 = arith.subf %26, %25 : vector<8x1xf32>
    %28 = arith.mulf %27, %21 : vector<8x1xf32>
    %29 = tpu.iota {dimensions = array<i32: 0>} : vector<8x1xi32>
    %c8_i32 = arith.constant 8 : i32
    %30 = arith.muli %arg0, %c8_i32 : i32
    %c8_i32_10 = arith.constant 8 : i32
    %31 = arith.subi %c8_i32_10, %30 : i32
    %32 = vector.broadcast %31 : i32 to vector<8x1xi32>
    %33 = arith.cmpi slt, %29, %32 : vector<8x1xi32>
    %cst_11 = arith.constant 0.000000e+00 : f32
    %34 = vector.broadcast %cst_11 : f32 to vector<8x1xf32>
    %35 = arith.select %33, %28, %34 : vector<8x1xi1>, vector<8x1xf32>
    %36 = vector.shape_cast %35 : vector<8x1xf32> to vector<1x8x1xf32>
    %cst_12 = arith.constant dense<0.000000e+00> : vector<1xf32>
    %37 = vector.multi_reduction <add>, %36, %cst_12 [1, 2] : vector<1x8x1xf32> to vector<1xf32>
    %38 = vector.shape_cast %37 : vector<1xf32> to vector<1x1x1xf32>
    %39 = vector.extract %38[0, 0, 0] : f32 from vector<1x1x1xf32>
    %c0_i32 = arith.constant 0 : i32
    %40 = arith.cmpi eq, %arg0, %c0_i32 : i32
    %41 = arith.extui %40 : i1 to i32
    %c0_i32_13 = arith.constant 0 : i32
    %42 = arith.cmpi ne, %41, %c0_i32_13 : i32
    scf.if %42 {
      %cst_20 = arith.constant 0.000000e+00 : f32
      %c0_21 = arith.constant 0 : index
      %c0_22 = arith.constant 0 : index
      %49 = memref.load %arg3[%c0_21, %c0_22] : memref<1x1xf32, #tpu.memory_space<smem>>
      memref.store %cst_20, %arg3[%c0_21, %c0_22] : memref<1x1xf32, #tpu.memory_space<smem>>
    } else {
    }
    %c0_14 = arith.constant 0 : index
    %c0_15 = arith.constant 0 : index
    %43 = memref.load %arg3[%c0_14, %c0_15] : memref<1x1xf32, #tpu.memory_space<smem>>
    %44 = arith.addf %43, %39 : f32
    %c0_16 = arith.constant 0 : index
    %c0_17 = arith.constant 0 : index
    %45 = memref.load %arg3[%c0_16, %c0_17] : memref<1x1xf32, #tpu.memory_space<smem>>
    memref.store %44, %arg3[%c0_16, %c0_17] : memref<1x1xf32, #tpu.memory_space<smem>>
    %c0_i32_18 = arith.constant 0 : i32
    %46 = arith.cmpi eq, %arg0, %c0_i32_18 : i32
    %47 = arith.extui %46 : i1 to i32
    %c0_i32_19 = arith.constant 0 : i32
    %48 = arith.cmpi ne, %47, %c0_i32_19 : i32
    scf.if %48 {
      %c0_20 = arith.constant 0 : index
      %c0_21 = arith.constant 0 : index
      %49 = memref.load %arg3[%c0_20, %c0_21] : memref<1x1xf32, #tpu.memory_space<smem>>
      %cst_22 = arith.constant 1.250000e-01 : f32
      %50 = arith.mulf %49, %cst_22 : f32
      %c0_23 = arith.constant 0 : index
      %c0_24 = arith.constant 0 : index
      %51 = memref.load %arg3[%c0_23, %c0_24] : memref<1x1xf32, #tpu.memory_space<smem>>
      memref.store %50, %arg3[%c0_23, %c0_24] : memref<1x1xf32, #tpu.memory_space<smem>>
    } else {
    }
    return
  }
  func.func @transform_0(%arg0: i32) -> (i32, i32) {
    %c0_i32 = arith.constant 0 : i32
    %c0_i32_0 = arith.constant 0 : i32
    return %arg0, %c0_i32 : i32, i32
  }
  func.func @transform_1(%arg0: i32) -> (i32, i32) {
    %c0_i32 = arith.constant 0 : i32
    %c0_i32_0 = arith.constant 0 : i32
    return %arg0, %c0_i32 : i32, i32
  }
  func.func @transform_2(%arg0: i32) -> (i32, i32) {
    %c0_i32 = arith.constant 0 : i32
    %c0_i32_0 = arith.constant 0 : i32
    %c0_i32_1 = arith.constant 0 : i32
    return %c0_i32, %c0_i32_0 : i32, i32
  }
}

</mosaic_0001>

<bundles_post_ra>
// kernel: tpu_custom_call.1
= control target key start
LH: loop header
LB: loop body
LE: loop exit
PB: predicated region body
PF: predicated region fallthrough
CT: control target
= control target key end

     0   :  { %7 = vsyncpa [#allocation3], 0  ;;  %s204_s0 = inlined_call_operand.hbm [shape: f32[8,182], index: 0, kind: input, shape index: {}]   ;;  %s205_s1 = inlined_call_operand.vmem [shape: s32[8,1], index: 1, kind: input, shape index: {}]   ;;  %s206_s2 = inlined_call_operand.hbm [shape: f32[1,1], index: 2, kind: output, shape index: {}]  }
   0x1   :  { %8 = vsyncpa [#allocation4], 0  ;;  %s14_s11 = sshll.u32 %s204_s0, 4  ;;  %s174_s12 = smov [#allocation2]   ;;  %s15_s11 = int_to_ptr.hbm [resolvable:$true] %s14_s11 }
   0x2   :  { %s16_s13 = sshll.u32 %s174_s12, 4  ;;  %s17_s13 = int_to_ptr.vmem [resolvable:$true] %s16_s13 }
   0x3   :  { %19 = dma.hbm_to_vmem [thread:$0]  %s15_s11, 256, %s17_s13, [#allocation3]  }
   0x4   :  { %170 = dma.done.wait [#allocation3], 256  }
   0x5   :  { %171 = vsyncadd [#allocation3], 4294967040  ;;  %v175_v0 = vmov 0   ;;  %vm29_vm0 = vcmask 441344   ;;  %v26_v1 = vld [vmem:[#allocation2] sm:$0xff]  ;;  %v27_v2 = vld [vmem:[#allocation2 + $0x8] sm:$0xff]  ;;  %v46_v11 = vlaneseq }
   0x6   :  { %125 = vset.pattern.permute.xlu0 %v175_v0  ;;  %v30_v3 = vsel %vm29_vm0, %v27_v2, -inf  ;;  %v28_v5 = vld [vmem:[%s205_s1] sm:$0xff]  ;;  %vm76_vm3 = vcmask 7168   ;;  %s108_s17 = sshll.u32 %s206_s2, 4  ;;  %s176_s19 = smov [#allocation5]   ;;  %s109_s17 = int_to_ptr.hbm [resolvable:$true] %s108_s17 }
   0x7   :  { %v31_v4 = vmax.f32 %v26_v1, %v30_v3  ;;  %v47_v14 = vand.u32 127, %v46_v11 }
   0x9   :  { %32 = vmax.xlane.f32.xlu0 %v31_v4  ;;  %v48_v17 = vadd.s32 128, %v47_v14 }
  0x1d   :  { %50 = vperm.xlu0 %125, %v28_v5  }
  0x7c   :  { %v33_v6 = vpop.xlane.xlu0 %32 }
  0x7d   :  { %v34_v7 = vsub.f32 %v26_v1, %v33_v6  ;;  %v35_v8 = vsub.f32 %v27_v2, %v33_v6 }
  0x7f   :  { %v36_v9 = vmul.f32 1.442695, %v34_v7  ;;  %v38_v10 = vmul.f32 1.442695, %v35_v8 }
  0x81   :  { %126 = vpow2.f32 %v36_v9 }
  0x82   :  { %128 = vpow2.f32 %v38_v10 }
  0x87   :  { %v127_v12 = vpop.eup %126 }
  0x88   :  { %v129_v13 = vpop.eup %128 }
  0x89   :  { %v40_v15 = vsel %vm29_vm0, %v129_v13, 0.0 }
  0x8a   :  { %v41_v16 = vadd.f32 %v127_v12, %v40_v15 }
  0x8c   :  { %42 = vadd.xlane.f32.xlu1 %v41_v16 }
  0x8f   :  { %v51_v18 = vpop.permute.xlu0 %50 }
  0x90   :  { %vm52_vm1 = vcmp.eq.s32.totalorder %v47_v14, %v51_v18  ;;  %vm53_vm2 = vcmp.eq.s32.totalorder %v48_v17, %v51_v18 }
  0x91   :  { %v54_v19 = vsel %vm52_vm1, %v34_v7, 0.0  ;;  %v55_v20 = vsel %vm53_vm2, %v35_v8, 0.0 }
  0x92   :  { %v56_v21 = vsel %vm29_vm0, %v55_v20, 0.0 }
  0x93   :  { %v57_v22 = vadd.f32 %v56_v21, %v54_v19 }
  0x95   :  { %58 = vadd.xlane.f32.xlu1 %v57_v22 }
  0xff   :  { %v43_v23 = vpop.xlane.xlu1 %42 }
 0x100   :  { %130 = vlog2.f32 %v43_v23 }
 0x106   :  { %v131_v24 = vpop.eup %130 }
 0x107   :  { %v45_v25 = vmul.f32 0.6931472, %v131_v24 }
 0x108   :  { %v59_v26 = vpop.xlane.xlu1 %58 }
 0x109   :  { %v60_v27 = vsub.f32 %v59_v26, %v45_v25 }
 0x10b   :  { %v61_v28 = vsub.f32 0.0, %v60_v27 }
 0x10d   :  { %v62_v29 = vsub.f32 0.0, %v61_v28 }
 0x10f   :  { %v63_v30 = vmul.f32 1.442695, %v62_v29 }
 0x111   :  { %132 = vpow2.f32 %v63_v30 }
 0x117   :  { %v133_v31 = vpop.eup %132 }
 0x118   :  { %v65_v32 = vsub.f32 1.0, %v133_v31 }
 0x11a   :  { %v66_v33 = vmul.f32 %v65_v32, %v65_v32 }
 0x11c   :  { %v67_v34 = vsub.f32 0.0, %v66_v33 }
 0x11e   :  { %v68_v35 = vmul.f32 %v67_v34, %v62_v29 }
 0x120   :  { %v77_v36 = vsel %vm76_vm3, %v68_v35, 0.0 }
 0x121   :  { %78 = vadd.xlane.f32.xlu2 %v77_v36 }
 0x194   :  { %v79_v37 = vpop.xlane.xlu2 %78 }
 0x195   :  { %v80_v38 = vrot.slane %v79_v37, 4 }
 0x197   :  { %v81_v39 = vadd.f32 %v80_v38, %v79_v37 }
 0x199   :  { %v82_v40 = vrot.slane %v81_v39, 2 }
 0x19b   :  { %v83_v41 = vadd.f32 %v82_v40, %v81_v39 }
 0x19d   :  { %v84_v42 = vrot.slane %v83_v41, 1 }
 0x19f   :  { %v85_v43 = vadd.f32 %v84_v42, %v83_v41 }
 0x1a1   :  { %119 = vpush %v85_v43 }
 0x1d2   :  { %s120_s0 = spop %119 }
 0x1d3   :  { %s101_s18 = smul.f32 0.125, %s120_s0 }
 0x1d5   :  { %102 = sst [smem:[#allocation5]] %s101_s18 }
 0x1d6   :  { %111 = dma.smem_to_hbm %s176_s19, 16, %s109_s17, [#allocation4]  }
 0x1d7   :  { %172 = dma.done.wait [#allocation4], 16  }
 0x1d8   :  { %173 = vsyncadd [#allocation4], 4294967280 }
 0x1d9   :  { %116 = sfence }
 0x1da   :  { %117 = vsyncpa [#allocation3], 1 }
 0x1db   :  { %118 = vsyncpa [#allocation4], 1 }

</bundles_post_ra>
